<compile_context>
chip_gen: v7x
topology: tpu7x:2x2x1
jax: 0.10.0
libtpu: 0.0.40
codegen_flags: <defaults>
</compile_context>

<pallas_src>
import functools

import jax
import jax.numpy as jnp
from jax.experimental import pallas as pl
from jax.experimental.pallas import tpu as pltpu

_PAD_BIAS = 1e30  # finite sentinel for padded dictionary rows (never the kth)


def _knn_patches_kernel(x_ref, w_ref, o_ref, *, k):
    # distances^T[n, m] = <dict_n, patch_m> + bias_n.  Bias is folded into the
    # MXU contraction (ones row in X, bias column in W); bf16 in, f32 accum.
    d = jnp.dot(w_ref[...], x_ref[...],
                preferred_element_type=jnp.float32)            # (n_pad, tm)

    # k-th smallest along the dictionary axis (axis 0 = sublanes), counting
    # duplicates exactly like torch.kthvalue: strip ALL copies of the running
    # min and accumulate the count until it reaches k.  k is small & static.
    tm = d.shape[1]
    work = d
    cnt = jnp.zeros((1, tm), jnp.int32)
    kth = jnp.full((1, tm), jnp.inf, jnp.float32)
    for i in range(k):
        cur = jnp.min(work, axis=0, keepdims=True)             # (1, tm)
        eq = work == cur                                       # (n_pad, tm)
        c = jnp.sum(eq.astype(jnp.int32), axis=0, keepdims=True)
        hit = jnp.logical_and(cnt < k, cnt + c >= k)
        kth = jnp.where(hit, cur, kth)
        if i + 1 < k:                              # last-iteration updates dead
            work = jnp.where(eq, jnp.float32(jnp.inf), work)
            cnt = cnt + c

    # up_to_k branch: mask = (distances <= kth).  N-major, lane-dense store.
    # TODO(synk): kmeans_triangle and exact-k scatter branches not implemented.
    o_ref[...] = (d <= kth).astype(o_ref.dtype)


def _im2col_nchw_T(images, kh, kw, stride, padding):
    """im2col emitted directly in (B, C*kh*kw, Ho*Wo) order (no XLA transpose)."""
    B, C, H, W = images.shape
    xp = jnp.pad(images, ((0, 0), (0, 0), (padding, padding), (padding, padding)))
    Ho = (H + 2 * padding - kh) // stride + 1
    Wo = (W + 2 * padding - kw) // stride + 1
    cols = []
    for i in range(kh):
        for j in range(kw):
            cols.append(xp[:, :, i:i + stride * Ho:stride, j:j + stride * Wo:stride])
    # (B, C, kh*kw, Ho, Wo) -> (B, C*kh*kw, Ho*Wo); feature order (c, i, j)
    # matches kernel.reshape(N, C*kh*kw).
    patches = jnp.stack(cols, axis=2).reshape(B, C * kh * kw, Ho * Wo)
    return patches, Ho, Wo


def knn_patches_embedding(images, kernel, bias, *, stride, padding, k,
                          tm=None, mask_dtype=jnp.bfloat16):
    """JAX/Pallas equivalent of KNearestPatchesEmbedding.forward (up_to_k=True).

    mask_dtype: bf16 by default (0/1 exactly representable, half the HBM bytes
    of f32); pass jnp.int8 to halve the output stream again if the consumer
    tolerates an integer mask.
    """
    B, C, H, W = images.shape
    N, Ck, kh, kw = kernel.shape
    assert Ck == C, "kernel channel dim must match image channels"
    assert 1 <= k <= N

    out_bytes = jnp.dtype(mask_dtype).itemsize

    # im2col in bf16, already in the kernel-consumed (B, K, Ho*Wo) orientation.
    # TODO(synk): fuse patch extraction into the kernel via halo'd image
    # BlockSpecs so the kh*kw-expanded X is never materialized in HBM at all.
    x, Ho, Wo = _im2col_nchw_T(images.astype(jnp.bfloat16), kh, kw, stride, padding)
    K = C * kh * kw
    HW = Ho * Wo

    # Dictionary axis now lives on sublanes: pad N only to the sublane quantum
    # of the output dtype (8 for f32 / 16 for bf16 / 32 for int8), not to 128.
    sub = max(8, 32 // out_bytes)
    n_pad = pl.cdiv(N, sub) * sub

    # Fold the bias into the MXU contraction (ones row in X, bias column in W)
    # and pad the contraction depth to a sublane multiple.
    Kp = pl.cdiv(K + 1, 8) * 8
    w_pad = jnp.zeros((n_pad, Kp), jnp.bfloat16)
    w_pad = w_pad.at[:N, :K].set(kernel.reshape(N, K).astype(jnp.bfloat16))
    w_pad = w_pad.at[:N, K].set(bias.astype(jnp.bfloat16))
    w_pad = w_pad.at[N:, K].set(_PAD_BIAS)      # sentinel rows can never be kth

    # Patch-tile (lane) size: as large as VMEM comfortably allows.  Per-step
    # live bytes ~ n_pad*tm*(d + work + temps) + double-buffered out/X blocks.
    if tm is None:
        tm = 2048
    per_col = n_pad * (12 + 2 * out_bytes) + 4 * Kp      # bytes per lane column
    vmem_budget = 20 * 1024 * 1024                       # fits v5e/v6e/v7x scoped VMEM
    tm_cap = max(128, (vmem_budget // per_col) // 128 * 128)
    tm = max(128, min(tm, tm_cap, pl.cdiv(HW, 128) * 128) // 128 * 128)

    # v7x shards "parallel" grid axes across its 2 TensorCores: prefer an even
    # number of grid steps.  Single-TC v5e/v6e: never force an extra split.
    try:
        is_v7x = "7" in jax.devices()[0].device_kind.lower()
    except Exception:  # pragma: no cover - defensive
        is_v7x = False
    if is_v7x and (B * pl.cdiv(HW, tm)) % 2 == 1 and tm > 128:
        tm_half = max(128, (tm // 2) // 128 * 128)
        if (B * pl.cdiv(HW, tm_half)) % 2 == 0:
            tm = tm_half

    hw_pad = pl.cdiv(HW, tm) * tm
    m_steps = hw_pad // tm

    # Assemble X^T: features, then the ones row (bias path), then zero padding.
    ones = jnp.ones((B, 1, HW), jnp.bfloat16)
    x = jnp.concatenate([x, ones], axis=1)                       # (B, K+1, HW)
    x = jnp.pad(x, ((0, 0), (0, Kp - (K + 1)), (0, hw_pad - HW)))

    kern = functools.partial(_knn_patches_kernel, k=k)
    cost = pl.CostEstimate(
        flops=int(2 * B * hw_pad * Kp * n_pad + 4 * k * B * hw_pad * n_pad),
        transcendentals=0,
        bytes_accessed=int(x.size * 2 + w_pad.size * 2
                           + B * n_pad * hw_pad * out_bytes),
    )
    mask = pl.pallas_call(
        kern,
        out_shape=jax.ShapeDtypeStruct((B, n_pad, hw_pad), mask_dtype),
        grid_spec=pltpu.PrefetchScalarGridSpec(
            num_scalar_prefetch=0,
            grid=(B, m_steps),
            in_specs=[
                pl.BlockSpec((None, Kp, tm), lambda b, m: (b, 0, m)),   # patches^T
                pl.BlockSpec((n_pad, Kp), lambda b, m: (0, 0)),         # dict+bias (resident)
            ],
            out_specs=pl.BlockSpec((None, n_pad, tm), lambda b, m: (b, 0, m)),
        ),
        compiler_params=pltpu.CompilerParams(
            dimension_semantics=("parallel", "parallel"),
            vmem_limit_bytes=32 * 1024 * 1024),
        cost_estimate=cost,
    )(x, w_pad)

    # Output is already (B, N, Ho*Wo)-ordered: no transpose.  The slice below
    # is a no-op whenever N hits the sublane quantum and Ho*Wo % tm == 0.
    return mask[:, :N, :HW].reshape(B, N, Ho, Wo)


if __name__ == "__main__":
    key = jax.random.PRNGKey(0)
    kx, kk, kb = jax.random.split(key, 3)

    B, C, H, W = 2, 4, 16, 16           # input images (NCHW)
    N_DICT, KH, KW = 32, 3, 3           # patches-dictionary size, patch size
    STRIDE, PADDING, K_NN = 1, 1, 3

    images = jax.random.normal(kx, (B, C, H, W), dtype=jnp.float32)
    # Deterministic synthetic dictionary kernel / bias (shapes as in __init__).
    kernel = jax.random.normal(kk, (N_DICT, C, KH, KW), dtype=jnp.float32)
    bias = jax.random.normal(kb, (N_DICT,), dtype=jnp.float32)

    fwd = jax.jit(functools.partial(knn_patches_embedding,
                                    stride=STRIDE, padding=PADDING, k=K_NN))
    mask = jax.block_until_ready(fwd(images, kernel, bias))
    assert mask.shape == (B, N_DICT, H, W)

    # Pure-JAX reference for the up_to_k mask with matching numerics: bf16
    # inputs / f32 accumulation, and a bf16-rounded bias (the kernel folds the
    # bias into the MXU contraction in bf16).
    dists = jax.lax.conv_general_dilated(
        images.astype(jnp.bfloat16), kernel.astype(jnp.bfloat16),
        window_strides=(STRIDE, STRIDE),
        padding=((PADDING, PADDING), (PADDING, PADDING)),
        dimension_numbers=("NCHW", "OIHW", "NCHW"),
        preferred_element_type=jnp.float32)
    dists = dists + bias.astype(jnp.bfloat16).astype(jnp.float32)[None, :, None, None]
    kth = jnp.sort(dists, axis=1)[:, K_NN - 1:K_NN]
    ref = (dists <= kth).astype(jnp.float32)

    mismatch = float(jnp.mean(jnp.abs(ref - mask.astype(jnp.float32))))
    assert mismatch < 5e-3, f"mask mismatch fraction {mismatch}"
    print("KERNEL_OK")
</pallas_src>

<mosaic_0001>
module attributes {stable_mosaic.version = 11 : i64} {
  func.func @_knn_patches_kernel(%arg0: i32, %arg1: i32, %arg2: memref<1x40x256xbf16, #tpu.memory_space<vmem>>, %arg3: memref<32x40xbf16, #tpu.memory_space<vmem>>, %arg4: memref<1x32x256xbf16, #tpu.memory_space<vmem>>) attributes {dimension_semantics = [#tpu.dimension_semantics<parallel>, #tpu.dimension_semantics<parallel>], iteration_bounds = array<i64: 2, 1>, scalar_prefetch = 0 : i64, scratch_operands = 0 : i64, tpu.core_type = #tpu.core_type<tc>, window_params = [{transform_indices = @transform_0, window_bounds = array<i64: 1, 40, 256>}, {pipeline_mode = #tpu.pipeline_mode<synchronous>, transform_indices = @transform_1, window_bounds = array<i64: 32, 40>}, {transform_indices = @transform_2, window_bounds = array<i64: 1, 32, 256>}]} {
    %c0 = arith.constant 0 : index
    %c0_0 = arith.constant 0 : index
    %0 = vector.load %arg3[%c0, %c0_0] : memref<32x40xbf16, #tpu.memory_space<vmem>>, vector<32x40xbf16>
    %c0_1 = arith.constant 0 : index
    %c0_2 = arith.constant 0 : index
    %c0_3 = arith.constant 0 : index
    %1 = vector.load %arg2[%c0_1, %c0_2, %c0_3] : memref<1x40x256xbf16, #tpu.memory_space<vmem>>, vector<1x40x256xbf16>
    %2 = vector.shape_cast %1 : vector<1x40x256xbf16> to vector<40x256xbf16>
    %cst = arith.constant dense<0.000000e+00> : vector<32x256xf32>
    %3 = tpu.matmul %0, %2, %cst {dimension_numbers = #tpu.dot_dimension_numbers<[1], [0], [0], [1], [0, 0, 1, 1], [], []>} : vector<32x40xbf16>, vector<40x256xbf16>, vector<32x256xf32> -> vector<32x256xf32>
    %c0_i32 = arith.constant 0 : i32
    %4 = vector.broadcast %c0_i32 : i32 to vector<1x256xi32>
    %cst_4 = arith.constant 0x7F800000 : f32
    %5 = vector.broadcast %cst_4 : f32 to vector<1x256xf32>
    %cst_5 = arith.constant dense<0x7F800000> : vector<256xf32>
    %6 = vector.multi_reduction <minimumf>, %3, %cst_5 [0] : vector<32x256xf32> to vector<256xf32>
    %7 = vector.shape_cast %6 : vector<256xf32> to vector<1x256xf32>
    %8 = vector.broadcast %7 : vector<1x256xf32> to vector<32x256xf32>
    %9 = arith.cmpf oeq, %3, %8 : vector<32x256xf32>
    %10 = arith.extui %9 : vector<32x256xi1> to vector<32x256xi32>
    %cst_6 = arith.constant dense<0> : vector<256xi32>
    %11 = vector.multi_reduction <add>, %10, %cst_6 [0] : vector<32x256xi32> to vector<256xi32>
    %12 = vector.shape_cast %11 : vector<256xi32> to vector<1x256xi32>
    %c3_i32 = arith.constant 3 : i32
    %13 = vector.broadcast %c3_i32 : i32 to vector<1x256xi32>
    %14 = arith.cmpi slt, %4, %13 : vector<1x256xi32>
    %15 = arith.addi %4, %12 : vector<1x256xi32>
    %c3_i32_7 = arith.constant 3 : i32
    %16 = vector.broadcast %c3_i32_7 : i32 to vector<1x256xi32>
    %17 = arith.cmpi sge, %15, %16 : vector<1x256xi32>
    %18 = arith.andi %14, %17 : vector<1x256xi1>
    %19 = arith.select %18, %7, %5 : vector<1x256xi1>, vector<1x256xf32>
    %cst_8 = arith.constant 0x7F800000 : f32
    %20 = vector.broadcast %cst_8 : f32 to vector<32x256xf32>
    %21 = arith.select %9, %20, %3 : vector<32x256xi1>, vector<32x256xf32>
    %22 = arith.addi %4, %12 : vector<1x256xi32>
    %cst_9 = arith.constant dense<0x7F800000> : vector<256xf32>
    %23 = vector.multi_reduction <minimumf>, %21, %cst_9 [0] : vector<32x256xf32> to vector<256xf32>
    %24 = vector.shape_cast %23 : vector<256xf32> to vector<1x256xf32>
    %25 = vector.broadcast %24 : vector<1x256xf32> to vector<32x256xf32>
    %26 = arith.cmpf oeq, %21, %25 : vector<32x256xf32>
    %27 = arith.extui %26 : vector<32x256xi1> to vector<32x256xi32>
    %cst_10 = arith.constant dense<0> : vector<256xi32>
    %28 = vector.multi_reduction <add>, %27, %cst_10 [0] : vector<32x256xi32> to vector<256xi32>
    %29 = vector.shape_cast %28 : vector<256xi32> to vector<1x256xi32>
    %c3_i32_11 = arith.constant 3 : i32
    %30 = vector.broadcast %c3_i32_11 : i32 to vector<1x256xi32>
    %31 = arith.cmpi slt, %22, %30 : vector<1x256xi32>
    %32 = arith.addi %22, %29 : vector<1x256xi32>
    %c3_i32_12 = arith.constant 3 : i32
    %33 = vector.broadcast %c3_i32_12 : i32 to vector<1x256xi32>
    %34 = arith.cmpi sge, %32, %33 : vector<1x256xi32>
    %35 = arith.andi %31, %34 : vector<1x256xi1>
    %36 = arith.select %35, %24, %19 : vector<1x256xi1>, vector<1x256xf32>
    %cst_13 = arith.constant 0x7F800000 : f32
    %37 = vector.broadcast %cst_13 : f32 to vector<32x256xf32>
    %38 = arith.select %26, %37, %21 : vector<32x256xi1>, vector<32x256xf32>
    %39 = arith.addi %22, %29 : vector<1x256xi32>
    %cst_14 = arith.constant dense<0x7F800000> : vector<256xf32>
    %40 = vector.multi_reduction <minimumf>, %38, %cst_14 [0] : vector<32x256xf32> to vector<256xf32>
    %41 = vector.shape_cast %40 : vector<256xf32> to vector<1x256xf32>
    %42 = vector.broadcast %41 : vector<1x256xf32> to vector<32x256xf32>
    %43 = arith.cmpf oeq, %38, %42 : vector<32x256xf32>
    %44 = arith.extui %43 : vector<32x256xi1> to vector<32x256xi32>
    %cst_15 = arith.constant dense<0> : vector<256xi32>
    %45 = vector.multi_reduction <add>, %44, %cst_15 [0] : vector<32x256xi32> to vector<256xi32>
    %46 = vector.shape_cast %45 : vector<256xi32> to vector<1x256xi32>
    %c3_i32_16 = arith.constant 3 : i32
    %47 = vector.broadcast %c3_i32_16 : i32 to vector<1x256xi32>
    %48 = arith.cmpi slt, %39, %47 : vector<1x256xi32>
    %49 = arith.addi %39, %46 : vector<1x256xi32>
    %c3_i32_17 = arith.constant 3 : i32
    %50 = vector.broadcast %c3_i32_17 : i32 to vector<1x256xi32>
    %51 = arith.cmpi sge, %49, %50 : vector<1x256xi32>
    %52 = arith.andi %48, %51 : vector<1x256xi1>
    %53 = arith.select %52, %41, %36 : vector<1x256xi1>, vector<1x256xf32>
    %54 = vector.broadcast %53 : vector<1x256xf32> to vector<32x256xf32>
    %55 = arith.cmpf ole, %3, %54 : vector<32x256xf32>
    %56 = arith.extui %55 : vector<32x256xi1> to vector<32x256xi32>
    %57 = arith.sitofp %56 : vector<32x256xi32> to vector<32x256xf32>
    %58 = arith.truncf %57 : vector<32x256xf32> to vector<32x256xbf16>
    %c0_18 = arith.constant 0 : index
    %c0_19 = arith.constant 0 : index
    %c0_20 = arith.constant 0 : index
    %59 = vector.load %arg4[%c0_18, %c0_19, %c0_20] : memref<1x32x256xbf16, #tpu.memory_space<vmem>>, vector<1x32x256xbf16>
    %60 = vector.shape_cast %59 : vector<1x32x256xbf16> to vector<32x256xbf16>
    %61 = vector.shape_cast %58 : vector<32x256xbf16> to vector<1x32x256xbf16>
    tpu.vector_store %arg4[%c0_18, %c0_19, %c0_20], %61 {strides = array<i32>} : memref<1x32x256xbf16, #tpu.memory_space<vmem>>, vector<1x32x256xbf16>,
    return
  }
  func.func @transform_0(%arg0: i32, %arg1: i32) -> (i32, i32, i32) {
    %c0_i32 = arith.constant 0 : i32
    %c0_i32_0 = arith.constant 0 : i32
    return %arg0, %c0_i32, %arg1 : i32, i32, i32
  }
  func.func @transform_1(%arg0: i32, %arg1: i32) -> (i32, i32) {
    %c0_i32 = arith.constant 0 : i32
    %c0_i32_0 = arith.constant 0 : i32
    %c0_i32_1 = arith.constant 0 : i32
    return %c0_i32, %c0_i32_0 : i32, i32
  }
  func.func @transform_2(%arg0: i32, %arg1: i32) -> (i32, i32, i32) {
    %c0_i32 = arith.constant 0 : i32
    %c0_i32_0 = arith.constant 0 : i32
    return %arg0, %c0_i32, %arg1 : i32, i32, i32
  }
}

</mosaic_0001>

<bundles_post_ra>
// kernel: knn_patches_embedding.1
= control target key start
LH: loop header
LB: loop body
LE: loop exit
PB: predicated region body
PF: predicated region fallthrough
CT: control target
= control target key end

     0   :  { %s752_s9 = smov 0   ;;  %s754_s10 = smov 0   ;;  %s938_s0 = inlined_call_operand.vmem [shape: bf16[2,40,256], index: 0, kind: input, shape index: {}]   ;;  %s939_s1 = inlined_call_operand.vmem [shape: bf16[32,40], index: 1, kind: input, shape index: {}]   ;;  %s940_s2 = inlined_call_operand.vmem [shape: bf16[2,32,256], index: 2, kind: output, shape index: {}]  }
   0x1   :  { %s756_s11 = smov 0  }
   0x2 LB: > { %s24_s12 = sadd.s32 1, %s729_s10  ;;  %p634_p0 = scmp.ge.s32.totalorder %s733_s11, 1  ;;  %s733_s11 = sphi %s756_s11, %s12_s11   ;;  %s729_s10 = sphi %s754_s10, %s946_s10   ;;  %s725_s9 = sphi %s752_s9, %s945_s9  }
   0x3   : > { %p26_p1 = scmp.ge.s32.totalorder %s24_s12, 2  ;;  %p133_p2 = scmp.lt.s32.totalorder %s733_s11, 3 }
   0x5   : > { %s948_s12 = smov (%p26_p1, %s24_s12), 0  ;;  %p134_p3 = pnand %p634_p0, %p133_p2 }
   0x6   : > { %p164_p4 = scmp.lt.s32.totalorder (!%p134_p3), %s725_s9, 1  ;;  %v735_v0 = vmov (!%p134_p3), 0   ;;  %vm235_vm0 = vcmask (!%p134_p3), 1043456   ;;  %v709_v9 = vld [vmem:[%s939_s1] sm:$0xff] (!%p134_p3)   ;;  %v710_v10 = vld [vmem:[%s939_s1 + $0x8] sm:$0xff] (!%p134_p3)   ;;  %vm228_vm1 = vcmask (!%p134_p3), 326656  }
   0x7   : > { %137 = sbr.rel (%p134_p3) target bundleno = 343 (0x157), region = 28  ;;  %274 = vmatprep.mubr.bf16.mxu0 (!%p134_p3), %v735_v0  ;;  %284 = vmatprep.mubr.bf16.mxu1 (!%p134_p3), %v735_v0 }
   0xe   : > { %s950_s9 = smov (!%p164_p4, %s725_s9), 1 }
   0xf   : > { %s674_s13 = smul.u32 40, %s950_s9  ;;  %s663_s21 = sshll.u32 %s950_s9, 5 }
  0x10   : > { %s181_s24 = scalar_lea.vmem %s940_s2, %s663_s21 }
  0x11   : > { %s171_s16 = scalar_lea.vmem %s938_s0, %s674_s13 }
  0x12   : > { %v701_v1 = vld [vmem:[%s171_s16 + $0x4] ss:$8 sps:$4 sm:$0xff]   ;;  %v703_v2 = vld [vmem:[%s171_s16] ss:$8 sps:$4 sm:$0xff]   ;;  %v704_v3 = vld [vmem:[%s171_s16 + $0x14] ss:$8 sps:$4 sm:$0xff]  }
  0x13   : > { %242 = vmatprep.subr.bf16.mxu0 %v701_v1  ;;  %668 = vmatprep.subr.bf16.mxu1 %v701_v1  ;;  %v192_v4 = vld [vmem:[%s171_s16 + $0x20] sm:$0xff]  ;;  %v706_v5 = vld [vmem:[%s171_s16 + $0x10] ss:$8 sps:$4 sm:$0xff]  }
  0x14   : > { %243 = vmatpush1.bf16.msra.mxu0 %v703_v2  ;;  %671 = vmatpush1.bf16.msra.mxu1 %v703_v2  ;;  %v645_v6 = vcombine.high %v192_v4, %v192_v4  ;;  %v644_v7 = vcombine.low %v192_v4, %v192_v4 }
  0x15   : > { %244 = vmatprep.subr.bf16.mxu0 %v704_v3  ;;  %669 = vmatprep.subr.bf16.mxu1 %v704_v3 }
  0x16   : > { %v237_v8 = vsel %vm235_vm0, %v644_v7, 0 }
  0x18   : > { %245 = vmatpush1.bf16.msra.mxu0 %v706_v5  ;;  %672 = vmatpush1.bf16.msra.mxu1 %v706_v5 }
  0x19   : > { %646 = vmatprep.subr.msk.bf16.mxu0 %vm235_vm0, %v645_v6  ;;  %670 = vmatprep.subr.msk.bf16.mxu1 %vm235_vm0, %v645_v6 }
  0x1c   : > { %247 = vmatpush1.bf16.msra.mxu0 %v237_v8  ;;  %673 = vmatpush1.bf16.msra.mxu1 %v237_v8 }
  0x1f   : > { %647 = vmatmul.mubr.msk.bf16.vlgmr.msra.gmra.mrb[0].mxu0 %vm228_vm1, %v709_v9  ;;  %648 = vmatmul.mubr.msk.bf16.vlgmr.msra.gmra.mrb[0].mxu1 %vm228_vm1, %v710_v10 }
  0xf2   : > { %v784_v11 = vpop.f32.mrb[0].mxu0  ;;  %v786_v12 = vpop.f32.mrb[0].mxu1 }
  0xf3   : > { %v295_v13 = vmin.f32 %v784_v11, %v786_v12  ;;  %v790_v14 = vpop.f32.mrb[1].mxu0  ;;  %v792_v15 = vpop.f32.mrb[1].mxu1 }
  0xf4   : > { %v304_v16 = vmin.f32 %v790_v14, %v792_v15  ;;  %v796_v17 = vpop.f32.mrb[2].mxu0  ;;  %v798_v18 = vpop.f32.mrb[2].mxu1 }
  0xf5   : > { %v296_v19 = vmin.f32 %v796_v17, %v798_v18  ;;  %v802_v20 = vpop.f32.mrb[3].mxu0  ;;  %v804_v21 = vpop.f32.mrb[3].mxu1 }
  0xf6   : > { %v305_v22 = vmin.f32 %v802_v20, %v804_v21 }
  0xf7   : > { %v297_v23 = vmin.f32 %v295_v13, %v296_v19 }
  0xf8   : > { %v306_v24 = vmin.f32 %v304_v16, %v305_v22 }
  0xf9   : > { %v298_v25 = vrot.slane %v297_v23, 4 }
  0xfa   : > { %v307_v26 = vrot.slane %v306_v24, 4 }
  0xfb   : > { %v299_v27 = vmin.f32 %v297_v23, %v298_v25 }
  0xfc   : > { %v308_v28 = vmin.f32 %v306_v24, %v307_v26 }
  0xfd   : > { %v300_v29 = vrot.slane %v299_v27, 2 }
  0xfe   : > { %v309_v30 = vrot.slane %v308_v28, 2 }
  0xff   : > { %v301_v31 = vmin.f32 %v299_v27, %v300_v29 }
 0x100   : > { %v310_v32 = vmin.f32 %v308_v28, %v309_v30 }
 0x101   : > { %v302_v33 = vrot.slane %v301_v31, 1 }
 0x102   : > { %v311_v34 = vrot.slane %v310_v32, 1 }
 0x103   : > { %v303_v35 = vmin.f32 %v301_v31, %v302_v33 }
 0x104   : > { %v808_v36 = vmin.f32 %v310_v32, %v311_v34 }
 0x105   : > { %vm313_vm2 = vcmp.eq.f32.partialorder %v784_v11, %v303_v35  ;;  %vm315_vm3 = vcmp.eq.f32.partialorder %v796_v17, %v303_v35  ;;  %vm317_vm4 = vcmp.eq.f32.partialorder %v786_v12, %v303_v35  ;;  %vm319_vm5 = vcmp.eq.f32.partialorder %v798_v18, %v303_v35 }
 0x106   : > { %v321_v37 = vsel %vm313_vm2, 1, %v735_v0  ;;  %v323_v38 = vsel %vm315_vm3, 1, %v735_v0  ;;  %v325_v39 = vsel %vm317_vm4, 1, %v735_v0  ;;  %v327_v40 = vsel %vm319_vm5, 1, %v735_v0 }
 0x107   : > { %v329_v41 = vadd.s32 %v325_v39, %v321_v37  ;;  %v330_v42 = vadd.s32 %v327_v40, %v323_v38  ;;  %v351_v43 = vsel %vm313_vm2, inf, %v784_v11  ;;  %v353_v44 = vsel %vm315_vm3, inf, %v796_v17 }
 0x108   : > { %v355_v45 = vsel %vm317_vm4, inf, %v786_v12  ;;  %v357_v46 = vsel %vm319_vm5, inf, %v798_v18  ;;  %vm314_vm6 = vcmp.eq.f32.partialorder %v790_v14, %v808_v36  ;;  %vm316_vm7 = vcmp.eq.f32.partialorder %v802_v20, %v808_v36 }
 0x109   : > { %v331_v47 = vadd.s32 %v330_v42, %v329_v41  ;;  %v359_v48 = vmin.f32 %v351_v43, %v355_v45  ;;  %v360_v49 = vmin.f32 %v353_v44, %v357_v46  ;;  %vm318_vm8 = vcmp.eq.f32.partialorder %v792_v15, %v808_v36 }
 0x10a   : > { %vm320_vm9 = vcmp.eq.f32.partialorder %v804_v21, %v808_v36  ;;  %v322_v50 = vsel %vm314_vm6, 1, %v735_v0  ;;  %v324_v51 = vsel %vm316_vm7, 1, %v735_v0  ;;  %v326_v52 = vsel %vm318_vm8, 1, %v735_v0 }
 0x10b   : > { %v332_v53 = vrot.slane %v331_v47, 4  ;;  %v361_v54 = vmin.f32 %v359_v48, %v360_v49  ;;  %v328_v55 = vsel %vm320_vm9, 1, %v735_v0  ;;  %v338_v56 = vadd.s32 %v326_v52, %v322_v50 }
 0x10c   : > { %v339_v57 = vadd.s32 %v328_v55, %v324_v51  ;;  %v835_v58 = vsel %vm314_vm6, inf, %v790_v14  ;;  %v838_v59 = vsel %vm316_vm7, inf, %v802_v20  ;;  %v841_v60 = vsel %vm318_vm8, inf, %v792_v15 }
 0x10d   : > { %v333_v61 = vadd.s32 %v332_v53, %v331_v47  ;;  %v362_v62 = vrot.slane %v361_v54, 4  ;;  %v844_v63 = vsel %vm320_vm9, inf, %v804_v21  ;;  %v368_v1 = vmin.f32 %v835_v58, %v841_v60 }
 0x10e   : > { %v340_v2 = vadd.s32 %v339_v57, %v338_v56  ;;  %v369_v3 = vmin.f32 %v838_v59, %v844_v63 }
 0x10f   : > { %v334_v4 = vrot.slane %v333_v61, 2  ;;  %v363_v5 = vmin.f32 %v361_v54, %v362_v62 }
 0x110   : > { %v341_v6 = vrot.slane %v340_v2, 4  ;;  %v370_v7 = vmin.f32 %v368_v1, %v369_v3 }
 0x111   : > { %v335_v8 = vadd.s32 %v334_v4, %v333_v61  ;;  %v364_v9 = vrot.slane %v363_v5, 2 }
 0x112   : > { %v342_v10 = vadd.s32 %v341_v6, %v340_v2  ;;  %v371_v13 = vrot.slane %v370_v7, 4 }
 0x113   : > { %v336_v16 = vrot.slane %v335_v8, 1  ;;  %v365_v19 = vmin.f32 %v363_v5, %v364_v9 }
 0x114   : > { %v343_v22 = vrot.slane %v342_v10, 2  ;;  %v372_v23 = vmin.f32 %v370_v7, %v371_v13 }
 0x115   : > { %v850_v24 = vadd.s32 %v336_v16, %v335_v8  ;;  %v366_v25 = vrot.slane %v365_v19, 1 }
 0x116   : > { %v344_v26 = vadd.s32 %v343_v22, %v342_v10  ;;  %v373_v27 = vrot.slane %v372_v23, 2 }
 0x117   : > { %vm347_vm10 = vcmp.ge.s32.totalorder %v850_v24, 3  ;;  %v853_v28 = vmin.f32 %v365_v19, %v366_v25  ;;  %vm411_vm4 = vcmp.lt.s32.totalorder %v850_v24, 3 }
 0x118   : > { %v855_v29 = vsel %vm347_vm10, %v303_v35, inf  ;;  %v345_v30 = vrot.slane %v344_v26, 1  ;;  %v374_v31 = vmin.f32 %v372_v23, %v373_v27 }
 0x119   : > { %vm377_vm11 = vcmp.eq.f32.partialorder %v351_v43, %v853_v28  ;;  %vm379_vm12 = vcmp.eq.f32.partialorder %v353_v44, %v853_v28  ;;  %vm381_vm13 = vcmp.eq.f32.partialorder %v355_v45, %v853_v28  ;;  %vm383_vm14 = vcmp.eq.f32.partialorder %v357_v46, %v853_v28 }
 0x11a   : > { %v385_v32 = vsel %vm377_vm11, 1, %v735_v0  ;;  %v387_v33 = vsel %vm379_vm12, 1, %v735_v0  ;;  %v389_v34 = vsel %vm381_vm13, 1, %v735_v0  ;;  %v391_v37 = vsel %vm383_vm14, 1, %v735_v0 }
 0x11b   : > { %v393_v35 = vadd.s32 %v389_v34, %v385_v32  ;;  %v394_v38 = vadd.s32 %v391_v37, %v387_v33  ;;  %v421_v39 = vsel %vm377_vm11, inf, %v351_v43  ;;  %v423_v40 = vsel %vm379_vm12, inf, %v353_v44 }
 0x11c   : > { %v425_v41 = vsel %vm381_vm13, inf, %v355_v45  ;;  %v427_v42 = vsel %vm383_vm14, inf, %v357_v46  ;;  %v865_v47 = vadd.s32 %v345_v30, %v344_v26  ;;  %v375_v48 = vrot.slane %v374_v31, 1 }
 0x11d   : > { %v395_v49 = vadd.s32 %v394_v38, %v393_v35  ;;  %v429_v50 = vmin.f32 %v421_v39, %v425_v41  ;;  %v430_v51 = vmin.f32 %v423_v40, %v427_v42 }
 0x11e   : > { %vm348_vm15 = vcmp.ge.s32.totalorder %v865_v47, 3  ;;  %v868_v52 = vmin.f32 %v374_v31, %v375_v48  ;;  %vm412_vm11 = vcmp.lt.s32.totalorder %v865_v47, 3 }
 0x11f   : > { %v396_v53 = vrot.slane %v395_v49, 4  ;;  %v431_v54 = vmin.f32 %v429_v50, %v430_v51  ;;  %v871_v55 = vsel %vm348_vm15, %v808_v36, inf }
 0x120   : > { %vm378_vm0 = vcmp.eq.f32.partialorder %v835_v58, %v868_v52  ;;  %vm380_vm1 = vcmp.eq.f32.partialorder %v838_v59, %v868_v52  ;;  %vm382_vm2 = vcmp.eq.f32.partialorder %v841_v60, %v868_v52  ;;  %vm384_vm3 = vcmp.eq.f32.partialorder %v844_v63, %v868_v52 }
 0x121   : > { %v397_v43 = vadd.s32 %v396_v53, %v395_v49  ;;  %v432_v44 = vrot.slane %v431_v54, 4  ;;  %v386_v45 = vsel %vm378_vm0, 1, %v735_v0  ;;  %v388_v46 = vsel %vm380_vm1, 1, %v735_v0 }
 0x122   : > { %v390_v36 = vsel %vm382_vm2, 1, %v735_v0  ;;  %v392_v56 = vsel %vm384_vm3, 1, %v735_v0  ;;  %v422_v57 = vsel %vm378_vm0, inf, %v835_v58  ;;  %v424_v61 = vsel %vm380_vm1, inf, %v838_v59 }
 0x123   : > { %v398_v62 = vrot.slane %v397_v43, 2  ;;  %v433_v1 = vmin.f32 %v431_v54, %v432_v44  ;;  %v402_v2 = vadd.s32 %v390_v36, %v386_v45  ;;  %v403_v3 = vadd.s32 %v392_v56, %v388_v46 }
 0x124   : > { %v426_v4 = vsel %vm382_vm2, inf, %v841_v60  ;;  %v428_v5 = vsel %vm384_vm3, inf, %v844_v63 }
 0x125   : > { %v399_v6 = vadd.s32 %v398_v62, %v397_v43  ;;  %v434_v7 = vrot.slane %v433_v1, 2  ;;  %v404_v8 = vadd.s32 %v403_v3, %v402_v2  ;;  %v438_v9 = vmin.f32 %v422_v57, %v426_v4 }
 0x126   : > { %v439_v10 = vmin.f32 %v424_v61, %v428_v5 }
 0x127   : > { %v400_v13 = vrot.slane %v399_v6, 1  ;;  %v435_v16 = vmin.f32 %v433_v1, %v434_v7  ;;  %v405_v19 = vrot.slane %v404_v8, 4 }
 0x128   : > { %v440_v22 = vmin.f32 %v438_v9, %v439_v10 }
 0x129   : > { %v401_v58 = vadd.s32 %v400_v13, %v399_v6  ;;  %v436_v23 = vrot.slane %v435_v16, 1  ;;  %v406_v59 = vadd.s32 %v405_v19, %v404_v8  ;;  %v736_v8 = vmov 0.0  }
 0x12a   : > { %v441_v25 = vrot.slane %v440_v22, 4 }
 0x12b   : > { %v413_v26 = vadd.s32 %v401_v58, %v850_v24  ;;  %v437_v27 = vmin.f32 %v435_v16, %v436_v23  ;;  %v407_v60 = vrot.slane %v406_v59, 2 }
 0x12c   : > { %v442_v63 = vmin.f32 %v440_v22, %v441_v25 }
 0x12d   : > { %vm415_vm5 = vcmp.ge.s32.totalorder %v413_v26, 3  ;;  %vm447_vm6 = vcmp.eq.f32.partialorder %v421_v39, %v437_v27  ;;  %vm449_vm7 = vcmp.eq.f32.partialorder %v423_v40, %v437_v27  ;;  %vm451_vm8 = vcmp.eq.f32.partialorder %v425_v41, %v437_v27 }
 0x12e   : > { %vm891_vm9 = vmand %vm411_vm4, %vm415_vm5  ;;  %vm453_vm10 = vcmp.eq.f32.partialorder %v427_v42, %v437_v27  ;;  %v455_v31 = vsel %vm447_vm6, 1, %v735_v0  ;;  %v457_v32 = vsel %vm449_vm7, 1, %v735_v0  ;;  %v459_v33 = vsel %vm451_vm8, 1, %v735_v0 }
 0x12f   : > { %v419_v24 = vsel %vm891_vm9, %v853_v28, %v855_v29  ;;  %v461_v34 = vsel %vm453_vm10, 1, %v735_v0  ;;  %v463_v37 = vadd.s32 %v459_v33, %v455_v31  ;;  %v408_v38 = vadd.s32 %v407_v60, %v406_v59 }
 0x130   : > { %v464_v35 = vadd.s32 %v461_v34, %v457_v32  ;;  %v443_v39 = vrot.slane %v442_v63, 2  ;;  %vm481_vm2 = vcmp.lt.s32.totalorder %v413_v26, 3 }
 0x131   : > { %v409_v41 = vrot.slane %v408_v38, 1 }
 0x132   : > { %v465_v40 = vadd.s32 %v464_v35, %v463_v37  ;;  %v444_v42 = vmin.f32 %v442_v63, %v443_v39 }
 0x133   : > { %v410_v49 = vadd.s32 %v409_v41, %v408_v38 }
 0x134   : > { %v466_v48 = vrot.slane %v465_v40, 4  ;;  %v445_v50 = vrot.slane %v444_v42, 1 }
 0x135   : > { %v414_v53 = vadd.s32 %v410_v49, %v865_v47 }
 0x136   : > { %v467_v51 = vadd.s32 %v466_v48, %v465_v40  ;;  %v446_v54 = vmin.f32 %v444_v42, %v445_v50 }
 0x137   : > { %vm416_vm12 = vcmp.ge.s32.totalorder %v414_v53, 3  ;;  %vm482_vm9 = vcmp.lt.s32.totalorder %v414_v53, 3 }
 0x138   : > { %v468_v43 = vrot.slane %v467_v51, 2  ;;  %vm448_vm13 = vcmp.eq.f32.partialorder %v422_v57, %v446_v54  ;;  %vm450_vm14 = vcmp.eq.f32.partialorder %v424_v61, %v446_v54  ;;  %vm905_vm15 = vmand %vm412_vm11, %vm416_vm12  ;;  %vm452_vm0 = vcmp.eq.f32.partialorder %v426_v4, %v446_v54 }
 0x139   : > { %vm454_vm1 = vcmp.eq.f32.partialorder %v428_v5, %v446_v54  ;;  %v456_v29 = vsel %vm448_vm13, 1, %v735_v0  ;;  %v458_v44 = vsel %vm450_vm14, 1, %v735_v0  ;;  %v420_v47 = vsel %vm905_vm15, %v868_v52, %v871_v55 }
 0x13a   : > { %v469_v45 = vadd.s32 %v468_v43, %v467_v51  ;;  %v460_v46 = vsel %vm452_vm0, 1, %v735_v0  ;;  %v462_v36 = vsel %vm454_vm1, 1, %v735_v0 }
 0x13b   : > { %v472_v56 = vadd.s32 %v460_v46, %v456_v29  ;;  %v473_v57 = vadd.s32 %v462_v36, %v458_v44 }
 0x13c   : > { %v470_v61 = vrot.slane %v469_v45, 1 }
 0x13d   : > { %v474_v62 = vadd.s32 %v473_v57, %v472_v56 }
 0x13e   : > { %v471_v1 = vadd.s32 %v470_v61, %v469_v45 }
 0x13f   : > { %v475_v2 = vrot.slane %v474_v62, 4 }
 0x140   : > { %v483_v3 = vadd.s32 %v471_v1, %v413_v26 }
 0x141   : > { %v476_v4 = vadd.s32 %v475_v2, %v474_v62 }
 0x142   : > { %vm485_vm3 = vcmp.ge.s32.totalorder %v483_v3, 3 }
 0x143   : > { %vm487_vm4 = vmand %vm481_vm2, %vm485_vm3  ;;  %v477_v5 = vrot.slane %v476_v4, 2 }
 0x144   : > { %v489_v6 = vsel %vm487_vm4, %v437_v27, %v419_v24 }
 0x145   : > { %vm491_vm5 = vcmp.le.f32.partialorder %v784_v11, %v489_v6  ;;  %vm493_vm6 = vcmp.le.f32.partialorder %v796_v17, %v489_v6  ;;  %vm495_vm7 = vcmp.le.f32.partialorder %v786_v12, %v489_v6  ;;  %vm497_vm8 = vcmp.le.f32.partialorder %v798_v18, %v489_v6 }
 0x146   : > { %v478_v0 = vadd.s32 %v477_v5, %v476_v4  ;;  %v649_v9 = vsel %vm491_vm5, 1.0, %v736_v8  ;;  %v651_v13 = vsel %vm493_vm6, 1.0, %v736_v8  ;;  %v653_v16 = vsel %vm495_vm7, 1.0, %v736_v8 }
 0x147   : > { %v655_v11 = vsel %vm497_vm8, 1.0, %v736_v8 }
 0x148   : > { %v479_v52 = vrot.slane %v478_v0, 1 }
 0x14a   : > { %v480_v55 = vadd.s32 %v479_v52, %v478_v0 }
 0x14c   : > { %v484_v7 = vadd.s32 %v480_v55, %v414_v53 }
 0x14e   : > { %vm486_vm10 = vcmp.ge.s32.totalorder %v484_v7, 3 }
 0x14f   : > { %vm488_vm11 = vmand %vm482_vm9, %vm486_vm10 }
 0x150   : > { %v490_v10 = vsel %vm488_vm11, %v446_v54, %v420_v47 }
 0x151   : > { %vm492_vm12 = vcmp.le.f32.partialorder %v790_v14, %v490_v10  ;;  %vm494_vm13 = vcmp.le.f32.partialorder %v802_v20, %v490_v10  ;;  %vm496_vm14 = vcmp.le.f32.partialorder %v792_v15, %v490_v10  ;;  %vm498_vm15 = vcmp.le.f32.partialorder %v804_v21, %v490_v10 }
 0x152   : > { %v650_v12 = vsel %vm492_vm12, 1.0, %v736_v8  ;;  %v652_v17 = vsel %vm494_vm13, 1.0, %v736_v8  ;;  %v654_v18 = vsel %vm496_vm14, 1.0, %v736_v8  ;;  %v656_v19 = vsel %vm498_vm15, 1.0, %v736_v8 }
 0x153   : > { %v664_v22 = vpack.c.bf16 %v650_v12, %v649_v9  ;;  %v665_v58 = vpack.c.bf16 %v652_v17, %v651_v13  ;;  %v666_v23 = vpack.c.bf16 %v654_v18, %v653_v16  ;;  %v667_v59 = vpack.c.bf16 %v656_v19, %v655_v11 }
 0x155   : > { %539 = vst [vmem:[%s181_s24] sm:$0xff] %v664_v22  ;;  %540 = vst [vmem:[%s181_s24 + $0x8] sm:$0xff] %v665_v58 }
 0x156   : > { %541 = vst [vmem:[%s181_s24 + $0x10] sm:$0xff] %v666_v23  ;;  %542 = vst [vmem:[%s181_s24 + $0x18] sm:$0xff] %v667_v59 }
 0x157 PF: > { %s12_s11 = sadd.s32 1, %s733_s11   ;;  %s945_s9 = smov %s729_s10 }
 0x158   : > { %p9_p5 = scmp.ge.s32.totalorder %s12_s11, 4   ;;  %s946_s10 = smov %s948_s12 }
 0x15a   :  { %11 = sbr.rel (!%p9_p5) target bundleno = 2 (0x2), region = 58 }

</bundles_post_ra>
